<compile_context>
chip_gen: v7x
topology: tpu7x:2x2x1
jax: 0.10.0
libtpu: 0.0.40
codegen_flags: <defaults>
</compile_context>

<pallas_src>
import jax
import jax.numpy as jnp
from jax.experimental import pallas as pl
from jax.experimental.pallas import tpu as pltpu


# ---------------------------------------------------------------------------
# kernel (factory: matmul compute dtype is a compile-time choice)
# ---------------------------------------------------------------------------
def _make_kernel(compute_dtype):
    def kernel(x_ref,
               w1_ref, b1_ref,
               w2_ref, b2_ref,
               w3_ref, b3_ref,
               w4_ref, b4_ref,
               o_ref):
        # Matmul operands in `compute_dtype` (bf16 by default -> full-rate MXU
        # on v5e/v6e/v7x) with f32 accumulation (preferred_element_type);
        # bias add / ReLU stay f32 (v5e's VPU has no bf16 path).  Each
        # activation is re-cast right before the next matmul so the previous
        # f32 intermediate dies early (keeps vld/vst pressure low).
        x = x_ref[...].astype(compute_dtype)

        h = jnp.dot(x, w1_ref[...], preferred_element_type=jnp.float32) + b1_ref[...]
        h = jnp.maximum(h, 0.0).astype(compute_dtype)

        h = jnp.dot(h, w2_ref[...], preferred_element_type=jnp.float32) + b2_ref[...]
        h = jnp.maximum(h, 0.0).astype(compute_dtype)

        h = jnp.dot(h, w3_ref[...], preferred_element_type=jnp.float32) + b3_ref[...]
        h = jnp.maximum(h, 0.0).astype(compute_dtype)

        out = jnp.dot(h, w4_ref[...], preferred_element_type=jnp.float32) + b4_ref[...]
        o_ref[...] = out.astype(o_ref.dtype)

    return kernel


# ---------------------------------------------------------------------------
# helpers
# ---------------------------------------------------------------------------
def _round_up(n, m):
    return ((n + m - 1) // m) * m


def _pad_to(a, shape):
    pads = [(0, t - s) for s, t in zip(a.shape, shape)]
    if all(p == (0, 0) for p in pads):
        return a
    return jnp.pad(a, pads)


def _tpu_vmem_and_cores():
    """Best-effort hardware query; conservative defaults (v7x: 64 MiB, 1 TC)."""
    vmem = 64 * 1024 * 1024
    cores = 1
    try:
        info = pltpu.get_tpu_info()
        vmem = int(getattr(info, "vmem_capacity_bytes", vmem))
        for name in ("num_cores", "tensorcores_per_chip", "num_tensorcores"):
            if hasattr(info, name):
                cores = int(getattr(info, name))
                break
    except Exception:  # query is advisory only; fall back to safe defaults
        pass
    return vmem, cores


def _pick_tile_b(B, per_row_bytes, resident_bytes, budget_bytes, cores):
    """Largest MXU/lane-friendly batch tile whose working set fits the VMEM
    budget.  Never shrinks the tile just to manufacture grid steps; only on
    multi-TC chips (v7x) does it prefer an even number of equal tiles so the
    'parallel' batch axis splits across both TensorCores."""
    B8 = _round_up(B, 8)
    cap = min(512, B8)

    def fits(t):
        return resident_bytes + t * per_row_bytes <= budget_bytes

    cands = [t for t in range(128, cap + 1, 128) if fits(t)]
    if not cands:  # tiny batch or very tight VMEM: fall back to 8-row steps
        cands = [t for t in range(8, cap + 1, 8) if fits(t)] or [min(B8, 8)]

    if cores >= 2:
        # prefer an even step count (both TCs busy), then the biggest tile
        return max(cands, key=lambda t: (pl.cdiv(B, t) % 2 == 0, t))
    return max(cands)


# ---------------------------------------------------------------------------
# one-time parameter preparation (hoisted OUT of the forward path)
# ---------------------------------------------------------------------------
def prepare_params(params, *, compute_dtype=jnp.bfloat16):
    """Pad every feature dim (including in_dim) up to a 128-lane multiple and
    cast weights to the matmul compute dtype.  Call ONCE and reuse the result
    across forward calls.  Zero padding is numerically exact: padded weight
    rows/cols and bias lanes are zero, so padded activations are ReLU(0)=0 and
    contribute nothing downstream."""
    w1 = jnp.asarray(params["w1"], jnp.float32)
    in_dim, d1 = w1.shape
    d2 = jnp.asarray(params["w2"], jnp.float32).shape[1]
    in_p = _round_up(in_dim, 128)
    d1p = _round_up(d1, 128)
    d2p = _round_up(d2, 128)

    def row(b, n):
        return _pad_to(jnp.asarray(b, jnp.float32).reshape(1, -1), (1, n))

    return dict(
        in_dim=in_dim, in_p=in_p, d1p=d1p, d2p=d2p, compute_dtype=compute_dtype,
        w1=_pad_to(w1, (in_p, d1p)).astype(compute_dtype),
        b1=row(params["b1"], d1p),
        w2=_pad_to(jnp.asarray(params["w2"], jnp.float32), (d1p, d2p)).astype(compute_dtype),
        b2=row(params["b2"], d2p),
        w3=_pad_to(jnp.asarray(params["w3"], jnp.float32), (d2p, d1p)).astype(compute_dtype),
        b3=row(params["b3"], d1p),
        w4=_pad_to(jnp.asarray(params["w4"], jnp.float32), (d1p, in_p)).astype(compute_dtype),
        b4=row(params["b4"], in_p),
    )


# ---------------------------------------------------------------------------
# forward
# ---------------------------------------------------------------------------
def feature_adaptor(x, prepared, *, tile_b=None, interpret=False):
    """Fused 4-layer MLP forward.  x: (B, in_dim) f32; `prepared` from
    prepare_params() (built once, reused every call)."""
    B, in_dim = x.shape
    assert in_dim == prepared["in_dim"], "x feature dim != prepared params"
    in_p, d1p, d2p = prepared["in_p"], prepared["d1p"], prepared["d2p"]
    cdt = prepared["compute_dtype"]
    w1, b1 = prepared["w1"], prepared["b1"]
    w2, b2 = prepared["w2"], prepared["b2"]
    w3, b3 = prepared["w3"], prepared["b3"]
    w4, b4 = prepared["w4"], prepared["b4"]

    weight_bytes = sum(a.size * a.dtype.itemsize for a in (w1, w2, w3, w4))
    bias_bytes = sum(a.size * a.dtype.itemsize for a in (b1, b2, b3, b4))
    cdt_size = jnp.dtype(cdt).itemsize
    # per-row working set: double-buffered f32 x/out tiles + f32 intermediates
    # + compute-dtype activation copies inside the body (conservative: assumes
    # all intermediates live at once).
    per_row = ((2 + 2) * in_p * 4
               + 4 * (in_p + 2 * d1p + d2p)
               + cdt_size * (in_p + 2 * d1p + d2p))

    phys_vmem, cores = _tpu_vmem_and_cores()
    budget = max(int(phys_vmem * 0.9) - (4 << 20), 8 << 20)

    if weight_bytes + bias_bytes + 128 * per_row > budget:
        # TODO(synk): for in_dim >= ~4k on v7x (64 MiB VMEM) resident weights
        # no longer fit; stream w1 over K-chunks / w4 over N-chunks with
        # pltpu.emit_pipeline (accumulator in VMEM scratch) instead of failing.
        raise NotImplementedError(
            f"resident weights ({weight_bytes / 2**20:.1f} MiB) + minimum tile do "
            f"not fit the VMEM budget ({budget / 2**20:.1f} MiB); weight-streaming "
            "path not implemented")

    if tile_b is None:
        tile_b = _pick_tile_b(B, per_row, weight_bytes + bias_bytes, budget, cores)
    assert tile_b % 8 == 0 or tile_b == B, "tile_b must be a multiple of 8 (or == B)"

    grid = (pl.cdiv(B, tile_b),)
    Bp = grid[0] * tile_b

    # Pad x rows to a tile multiple and cols to the 128-lane multiple; both are
    # no-ops for already-aligned shapes.  Extra zero rows/cols are exact and
    # sliced off below.
    xp = _pad_to(jnp.asarray(x, jnp.float32), (Bp, in_p))

    # Lane-dense I/O tiles (in_p is a 128 multiple -> unmasked vst).
    # NOTE: if profiling shows exposed input DMA at mem-bound sizes, sweep
    # pipeline_mode=pl.Buffered(3) on the x spec only.
    io_spec = pl.BlockSpec((tile_b, in_p), lambda i: (i, 0))

    def const_spec(arr, mode):
        # grid-invariant operand: whole array, block index always (0, 0)
        if mode is None:
            return pl.BlockSpec(arr.shape, lambda i: (0,) * arr.ndim)
        return pl.BlockSpec(arr.shape, lambda i: (0,) * arr.ndim, pipeline_mode=mode)

    # Advisory cost estimate so XLA can overlap surrounding ops with the call.
    flops = 2 * Bp * (in_p * d1p + d1p * d2p + d2p * d1p + d1p * in_p)
    bytes_accessed = 2 * Bp * in_p * 4 + weight_bytes + bias_bytes
    cost = pl.CostEstimate(flops=flops, transcendentals=0,
                           bytes_accessed=bytes_accessed)

    kernel = _make_kernel(cdt)

    def build(weight_mode, n_weight_buffers):
        # VMEM limit consistent with the buffering mode actually used.
        vmem_limit = min(
            int(phys_vmem * 0.9),
            n_weight_buffers * (weight_bytes + bias_bytes)
            + tile_b * per_row + (4 << 20))
        return pl.pallas_call(
            kernel,
            out_shape=jax.ShapeDtypeStruct((Bp, in_p), jnp.float32),
            grid_spec=pltpu.PrefetchScalarGridSpec(
                num_scalar_prefetch=0,
                grid=grid,
                in_specs=[
                    io_spec,
                    const_spec(w1, weight_mode), const_spec(b1, weight_mode),
                    const_spec(w2, weight_mode), const_spec(b2, weight_mode),
                    const_spec(w3, weight_mode), const_spec(b3, weight_mode),
                    const_spec(w4, weight_mode), const_spec(b4, weight_mode),
                ],
                out_specs=io_spec,
            ),
            compiler_params=pltpu.CompilerParams(
                dimension_semantics=("parallel",),
                vmem_limit_bytes=int(vmem_limit)),
            cost_estimate=cost,
            interpret=interpret,
        )

    args = (xp, w1, b1, w2, b2, w3, b3, w4, b4)
    try:
        # Grid-invariant weights/biases never change across the batch grid:
        # single-buffer them to halve their VMEM footprint.
        out = build(pl.Buffered(1), 1)(*args)
    except (pltpu.LoweringException, ValueError, TypeError, NotImplementedError):
        # This jax/mosaic build rejects buffer_count=1: fall back to the
        # default double-buffering (correct, slightly more VMEM).
        out = build(None, 2)(*args)

    if Bp != B or in_p != in_dim:
        out = out[:B, :in_dim]
    return out


# ---------------------------------------------------------------------------
# params / reference
# ---------------------------------------------------------------------------
def init_params(key, in_dim, dtype=jnp.float32):
    """Deterministic PyTorch-style init: U(-1/sqrt(fan_in), 1/sqrt(fan_in))."""
    dims = [in_dim, in_dim // 2, in_dim // 4, in_dim // 2, in_dim]
    params = {}
    for idx in range(4):
        fan_in, fan_out = dims[idx], dims[idx + 1]
        key, kw, kb = jax.random.split(key, 3)
        bound = 1.0 / (fan_in ** 0.5)
        params[f"w{idx + 1}"] = jax.random.uniform(
            kw, (fan_in, fan_out), dtype, minval=-bound, maxval=bound)
        params[f"b{idx + 1}"] = jax.random.uniform(
            kb, (1, fan_out), dtype, minval=-bound, maxval=bound)
    return params


def reference_forward(x, params):
    """Exact f32 semantics of the PyTorch module."""
    h = jnp.maximum(x @ params["w1"] + params["b1"], 0.0)
    h = jnp.maximum(h @ params["w2"] + params["b2"], 0.0)
    h = jnp.maximum(h @ params["w3"] + params["b3"], 0.0)
    return h @ params["w4"] + params["b4"]


if __name__ == "__main__":
    key = jax.random.PRNGKey(0)
    B, in_dim = 128, 256  # small test; in_dim//4 = 64 exercises the 128-lane padding

    kx, kp = jax.random.split(key)
    x = jax.random.normal(kx, (B, in_dim), jnp.float32)
    params = init_params(kp, in_dim)
    ref = reference_forward(x, params)

    # Default path: bf16 MXU operands + f32 accumulation.  Documented tradeoff:
    # ~1e-2-level relative error vs. the pure-f32 PyTorch reference.
    prepared_bf16 = prepare_params(params)                       # one-time prep
    out = jax.block_until_ready(feature_adaptor(x, prepared_bf16))
    assert out.shape == (B, in_dim)
    err_bf16 = float(jnp.max(jnp.abs(out - ref)))
    assert jnp.allclose(out, ref, atol=5e-2, rtol=5e-2), \
        f"bf16 path mismatch vs reference (max abs err {err_bf16})"

    # Full-fidelity option: f32 matmul operands (slower MXU, higher accuracy).
    prepared_f32 = prepare_params(params, compute_dtype=jnp.float32)
    out32 = jax.block_until_ready(feature_adaptor(x, prepared_f32))
    err_f32 = float(jnp.max(jnp.abs(out32 - ref)))
    assert jnp.allclose(out32, ref, atol=5e-2, rtol=5e-2), \
        f"f32 path mismatch vs reference (max abs err {err_f32})"

    print("KERNEL_OK")
</pallas_src>

<mosaic_0001>
module attributes {stable_mosaic.version = 11 : i64} {
  func.func @kernel(%arg0: i32, %arg1: memref<128x256xf32, #tpu.memory_space<vmem>>, %arg2: memref<256x128xbf16, #tpu.memory_space<vmem>>, %arg3: memref<1x128xf32, #tpu.memory_space<vmem>>, %arg4: memref<128x128xbf16, #tpu.memory_space<vmem>>, %arg5: memref<1x128xf32, #tpu.memory_space<vmem>>, %arg6: memref<128x128xbf16, #tpu.memory_space<vmem>>, %arg7: memref<1x128xf32, #tpu.memory_space<vmem>>, %arg8: memref<128x256xbf16, #tpu.memory_space<vmem>>, %arg9: memref<1x256xf32, #tpu.memory_space<vmem>>, %arg10: memref<128x256xf32, #tpu.memory_space<vmem>>) attributes {dimension_semantics = [#tpu.dimension_semantics<parallel>], iteration_bounds = array<i64: 1>, scalar_prefetch = 0 : i64, scratch_operands = 0 : i64, tpu.core_type = #tpu.core_type<tc>, window_params = [{transform_indices = @transform_0, window_bounds = array<i64: 128, 256>}, {pipeline_mode = #tpu.pipeline_mode<synchronous>, transform_indices = @transform_1, window_bounds = array<i64: 256, 128>}, {pipeline_mode = #tpu.pipeline_mode<synchronous>, transform_indices = @transform_2, window_bounds = array<i64: 1, 128>}, {pipeline_mode = #tpu.pipeline_mode<synchronous>, transform_indices = @transform_3, window_bounds = array<i64: 128, 128>}, {pipeline_mode = #tpu.pipeline_mode<synchronous>, transform_indices = @transform_4, window_bounds = array<i64: 1, 128>}, {pipeline_mode = #tpu.pipeline_mode<synchronous>, transform_indices = @transform_5, window_bounds = array<i64: 128, 128>}, {pipeline_mode = #tpu.pipeline_mode<synchronous>, transform_indices = @transform_6, window_bounds = array<i64: 1, 128>}, {pipeline_mode = #tpu.pipeline_mode<synchronous>, transform_indices = @transform_7, window_bounds = array<i64: 128, 256>}, {pipeline_mode = #tpu.pipeline_mode<synchronous>, transform_indices = @transform_8, window_bounds = array<i64: 1, 256>}, {transform_indices = @transform_9, window_bounds = array<i64: 128, 256>}]} {
    %c0 = arith.constant 0 : index
    %c0_0 = arith.constant 0 : index
    %0 = vector.load %arg1[%c0, %c0_0] : memref<128x256xf32, #tpu.memory_space<vmem>>, vector<128x256xf32>
    %1 = arith.truncf %0 : vector<128x256xf32> to vector<128x256xbf16>
    %c0_1 = arith.constant 0 : index
    %c0_2 = arith.constant 0 : index
    %2 = vector.load %arg2[%c0_1, %c0_2] : memref<256x128xbf16, #tpu.memory_space<vmem>>, vector<256x128xbf16>
    %cst = arith.constant dense<0.000000e+00> : vector<128x128xf32>
    %3 = tpu.matmul %1, %2, %cst {dimension_numbers = #tpu.dot_dimension_numbers<[1], [0], [0], [1], [0, 0, 1, 1], [], []>} : vector<128x256xbf16>, vector<256x128xbf16>, vector<128x128xf32> -> vector<128x128xf32>
    %c0_3 = arith.constant 0 : index
    %c0_4 = arith.constant 0 : index
    %4 = vector.load %arg3[%c0_3, %c0_4] : memref<1x128xf32, #tpu.memory_space<vmem>>, vector<1x128xf32>
    %5 = vector.broadcast %4 : vector<1x128xf32> to vector<128x128xf32>
    %6 = arith.addf %3, %5 : vector<128x128xf32>
    %cst_5 = arith.constant 0.000000e+00 : f32
    %7 = vector.broadcast %cst_5 : f32 to vector<128x128xf32>
    %8 = arith.maximumf %6, %7 : vector<128x128xf32>
    %9 = arith.truncf %8 : vector<128x128xf32> to vector<128x128xbf16>
    %c0_6 = arith.constant 0 : index
    %c0_7 = arith.constant 0 : index
    %10 = vector.load %arg4[%c0_6, %c0_7] : memref<128x128xbf16, #tpu.memory_space<vmem>>, vector<128x128xbf16>
    %cst_8 = arith.constant dense<0.000000e+00> : vector<128x128xf32>
    %11 = tpu.matmul %9, %10, %cst_8 {dimension_numbers = #tpu.dot_dimension_numbers<[1], [0], [0], [1], [0, 0, 1, 1], [], []>} : vector<128x128xbf16>, vector<128x128xbf16>, vector<128x128xf32> -> vector<128x128xf32>
    %c0_9 = arith.constant 0 : index
    %c0_10 = arith.constant 0 : index
    %12 = vector.load %arg5[%c0_9, %c0_10] : memref<1x128xf32, #tpu.memory_space<vmem>>, vector<1x128xf32>
    %13 = vector.broadcast %12 : vector<1x128xf32> to vector<128x128xf32>
    %14 = arith.addf %11, %13 : vector<128x128xf32>
    %cst_11 = arith.constant 0.000000e+00 : f32
    %15 = vector.broadcast %cst_11 : f32 to vector<128x128xf32>
    %16 = arith.maximumf %14, %15 : vector<128x128xf32>
    %17 = arith.truncf %16 : vector<128x128xf32> to vector<128x128xbf16>
    %c0_12 = arith.constant 0 : index
    %c0_13 = arith.constant 0 : index
    %18 = vector.load %arg6[%c0_12, %c0_13] : memref<128x128xbf16, #tpu.memory_space<vmem>>, vector<128x128xbf16>
    %cst_14 = arith.constant dense<0.000000e+00> : vector<128x128xf32>
    %19 = tpu.matmul %17, %18, %cst_14 {dimension_numbers = #tpu.dot_dimension_numbers<[1], [0], [0], [1], [0, 0, 1, 1], [], []>} : vector<128x128xbf16>, vector<128x128xbf16>, vector<128x128xf32> -> vector<128x128xf32>
    %c0_15 = arith.constant 0 : index
    %c0_16 = arith.constant 0 : index
    %20 = vector.load %arg7[%c0_15, %c0_16] : memref<1x128xf32, #tpu.memory_space<vmem>>, vector<1x128xf32>
    %21 = vector.broadcast %20 : vector<1x128xf32> to vector<128x128xf32>
    %22 = arith.addf %19, %21 : vector<128x128xf32>
    %cst_17 = arith.constant 0.000000e+00 : f32
    %23 = vector.broadcast %cst_17 : f32 to vector<128x128xf32>
    %24 = arith.maximumf %22, %23 : vector<128x128xf32>
    %25 = arith.truncf %24 : vector<128x128xf32> to vector<128x128xbf16>
    %c0_18 = arith.constant 0 : index
    %c0_19 = arith.constant 0 : index
    %26 = vector.load %arg8[%c0_18, %c0_19] : memref<128x256xbf16, #tpu.memory_space<vmem>>, vector<128x256xbf16>
    %cst_20 = arith.constant dense<0.000000e+00> : vector<128x256xf32>
    %27 = tpu.matmul %25, %26, %cst_20 {dimension_numbers = #tpu.dot_dimension_numbers<[1], [0], [0], [1], [0, 0, 1, 1], [], []>} : vector<128x128xbf16>, vector<128x256xbf16>, vector<128x256xf32> -> vector<128x256xf32>
    %c0_21 = arith.constant 0 : index
    %c0_22 = arith.constant 0 : index
    %28 = vector.load %arg9[%c0_21, %c0_22] : memref<1x256xf32, #tpu.memory_space<vmem>>, vector<1x256xf32>
    %29 = vector.broadcast %28 : vector<1x256xf32> to vector<128x256xf32>
    %30 = arith.addf %27, %29 : vector<128x256xf32>
    %c0_23 = arith.constant 0 : index
    %c0_24 = arith.constant 0 : index
    %31 = vector.load %arg10[%c0_23, %c0_24] : memref<128x256xf32, #tpu.memory_space<vmem>>, vector<128x256xf32>
    tpu.vector_store %arg10[%c0_23, %c0_24], %30 {strides = array<i32>} : memref<128x256xf32, #tpu.memory_space<vmem>>, vector<128x256xf32>,
    return
  }
  func.func @transform_0(%arg0: i32) -> (i32, i32) {
    %c0_i32 = arith.constant 0 : i32
    %c0_i32_0 = arith.constant 0 : i32
    return %arg0, %c0_i32 : i32, i32
  }
  func.func @transform_1(%arg0: i32) -> (i32, i32) {
    %c0_i32 = arith.constant 0 : i32
    %c0_i32_0 = arith.constant 0 : i32
    %c0_i32_1 = arith.constant 0 : i32
    return %c0_i32, %c0_i32_0 : i32, i32
  }
  func.func @transform_2(%arg0: i32) -> (i32, i32) {
    %c0_i32 = arith.constant 0 : i32
    %c0_i32_0 = arith.constant 0 : i32
    %c0_i32_1 = arith.constant 0 : i32
    return %c0_i32, %c0_i32_0 : i32, i32
  }
  func.func @transform_3(%arg0: i32) -> (i32, i32) {
    %c0_i32 = arith.constant 0 : i32
    %c0_i32_0 = arith.constant 0 : i32
    %c0_i32_1 = arith.constant 0 : i32
    return %c0_i32, %c0_i32_0 : i32, i32
  }
  func.func @transform_4(%arg0: i32) -> (i32, i32) {
    %c0_i32 = arith.constant 0 : i32
    %c0_i32_0 = arith.constant 0 : i32
    %c0_i32_1 = arith.constant 0 : i32
    return %c0_i32, %c0_i32_0 : i32, i32
  }
  func.func @transform_5(%arg0: i32) -> (i32, i32) {
    %c0_i32 = arith.constant 0 : i32
    %c0_i32_0 = arith.constant 0 : i32
    %c0_i32_1 = arith.constant 0 : i32
    return %c0_i32, %c0_i32_0 : i32, i32
  }
  func.func @transform_6(%arg0: i32) -> (i32, i32) {
    %c0_i32 = arith.constant 0 : i32
    %c0_i32_0 = arith.constant 0 : i32
    %c0_i32_1 = arith.constant 0 : i32
    return %c0_i32, %c0_i32_0 : i32, i32
  }
  func.func @transform_7(%arg0: i32) -> (i32, i32) {
    %c0_i32 = arith.constant 0 : i32
    %c0_i32_0 = arith.constant 0 : i32
    %c0_i32_1 = arith.constant 0 : i32
    return %c0_i32, %c0_i32_0 : i32, i32
  }
  func.func @transform_8(%arg0: i32) -> (i32, i32) {
    %c0_i32 = arith.constant 0 : i32
    %c0_i32_0 = arith.constant 0 : i32
    %c0_i32_1 = arith.constant 0 : i32
    return %c0_i32, %c0_i32_0 : i32, i32
  }
  func.func @transform_9(%arg0: i32) -> (i32, i32) {
    %c0_i32 = arith.constant 0 : i32
    %c0_i32_0 = arith.constant 0 : i32
    return %arg0, %c0_i32 : i32, i32
  }
}

</mosaic_0001>

<bundles_post_ra>
// kernel: tpu_custom_call.1
= control target key start
LH: loop header
LB: loop body
LE: loop exit
PB: predicated region body
PF: predicated region fallthrough
CT: control target
= control target key end

     0   :  { %14 = vsyncpa [#allocation3], 0  ;;  %s1729_s0 = inlined_call_operand.hbm [shape: f32[128,256], index: 0, kind: input, shape index: {}]   ;;  %s1730_s1 = inlined_call_operand.hbm [shape: bf16[256,128], index: 1, kind: input, shape index: {}]   ;;  %s1731_s2 = inlined_call_operand.vmem [shape: f32[1,128], index: 2, kind: input, shape index: {}]   ;;  %s1732_s3 = inlined_call_operand.hbm [shape: bf16[128,128], index: 3, kind: input, shape index: {}]   ;;  %s1733_s4 = inlined_call_operand.vmem [shape: f32[1,128], index: 4, kind: input, shape index: {}]   ;;  %s1734_s5 = inlined_call_operand.hbm [shape: bf16[128,128], index: 5, kind: input, shape index: {}]   ;;  %s1735_s6 = inlined_call_operand.vmem [shape: f32[1,128], index: 6, kind: input, shape index: {}]   ;;  %s1736_s7 = inlined_call_operand.hbm [shape: bf16[128,256], index: 7, kind: input, shape index: {}]   ;;  %s1737_s8 = inlined_call_operand.vmem [shape: f32[1,256], index: 8, kind: input, shape index: {}]   ;;  %s1738_s9 = inlined_call_operand.hbm [shape: f32[128,256], index: 9, kind: output, shape index: {}]  }
   0x1   :  { %15 = vsyncpa [#allocation6], 0 }
   0x2   :  { %16 = vsyncpa [#allocation9], 0 }
   0x3   :  { %17 = vsyncpa [#allocation4], 0  ;;  %s1498_s30 = smov [#allocation5]   ;;  %s1358_s13 = scalar_lea.hbm %s1730_s1, 2048 }
   0x4   :  { %s35_s10 = sshll.u32 %s1498_s30, 4  ;;  %p1359_p0 = scmp.ne.s32.totalorder %s1730_s1, %s1358_s13  ;;  %s36_s10 = int_to_ptr.vmem [resolvable:$true] %s35_s10 }
   0x5   :  { %p1362_p1 = scmp.lt.u32.totalorder %s1358_s13, %s1730_s1 }
   0x7   :  { %p1364_p2 = pnand %p1362_p1, %p1359_p0 }
   0x9   :  { %1367 = shalt.err (!%p1364_p2)
}
   0xa   :  { %s1368_s18 = scalar_lea.vmem %s36_s10, 2048  ;;  %p1373_p4 = scmp.lt.s32.totalorder %s36_s10, %s36_s10 }
   0xb   :  { %p1369_p3 = scmp.ne.s32.totalorder %s36_s10, %s1368_s18  ;;  %p1374_p5 = scmp.lt.s32.totalorder %s1368_s18, %s1368_s18 }
   0xd   :  { %p1375_p6 = por %p1374_p5, %p1373_p4 }
   0xf   :  { %p1376_p7 = pnand %p1375_p6, %p1369_p3 }
  0x11   :  { %1379 = shalt.err (!%p1376_p7)
}
  0x12   :  { %s1499_s19 = smov 64   ;;  %s1500_s20 = smov 4  }
  0x13   :  { %41 = dma.hbm_to_vmem [thread:$0]  %s1730_s1, 2048, %s36_s10, [#allocation6], %s1499_s19, %s1499_s19, %s1500_s20  }
  0x14   :  { %s1501_s23 = smov [#allocation8]   ;;  %s1502_s25 = smov [#allocation2]  }
  0x15   :  { %s63_s24 = sshll.u32 %s1501_s23, 4  ;;  %s23_s26 = sshll.u32 %s1502_s25, 4  ;;  %s64_s24 = int_to_ptr.vmem [resolvable:$true] %s63_s24  ;;  %s24_s26 = int_to_ptr.vmem [resolvable:$true] %s23_s26 }
  0x16   :  { %s1380_s29 = scalar_lea.hbm %s1734_s5, 1024 }
  0x17   :  { %p1381_p8 = scmp.ne.s32.totalorder %s1734_s5, %s1380_s29  ;;  %p1384_p9 = scmp.lt.u32.totalorder %s1380_s29, %s1734_s5 }
  0x19   :  { %p1386_p10 = pnand %p1384_p9, %p1381_p8 }
  0x1b   :  { %1389 = shalt.err (!%p1386_p10)
}
  0x1c   :  { %s1390_s1 = scalar_lea.vmem %s64_s24, 1024  ;;  %p1395_p12 = scmp.lt.s32.totalorder %s64_s24, %s64_s24 }
  0x1d   :  { %p1391_p11 = scmp.ne.s32.totalorder %s64_s24, %s1390_s1  ;;  %p1396_p13 = scmp.lt.s32.totalorder %s1390_s1, %s1390_s1 }
  0x1f   :  { %p1397_p0 = por %p1396_p13, %p1395_p12 }
  0x21   :  { %p1398_p1 = pnand %p1397_p0, %p1391_p11 }
  0x23   :  { %1401 = shalt.err (!%p1398_p1)
}
  0x24   :  { %69 = dma.hbm_to_vmem [thread:$0]  %s1734_s5, 1024, %s64_s24, [#allocation9], %s1499_s19, %s1499_s19, %s1500_s20  }
  0x25   :  { %s1402_s17 = scalar_lea.hbm %s1729_s0, 4096 }
  0x26   :  { %p1403_p2 = scmp.ne.s32.totalorder %s1729_s0, %s1402_s17  ;;  %p1406_p3 = scmp.lt.u32.totalorder %s1402_s17, %s1729_s0 }
  0x28   :  { %p1408_p4 = pnand %p1406_p3, %p1403_p2 }
  0x2a   :  { %1411 = shalt.err (!%p1408_p4)
}
  0x2b   :  { %s1412_s25 = scalar_lea.vmem %s24_s26, 4096  ;;  %p1417_p6 = scmp.lt.s32.totalorder %s24_s26, %s24_s26 }
  0x2c   :  { %p1413_p5 = scmp.ne.s32.totalorder %s24_s26, %s1412_s25  ;;  %p1418_p7 = scmp.lt.s32.totalorder %s1412_s25, %s1412_s25 }
  0x2e   :  { %p1419_p8 = por %p1418_p7, %p1417_p6 }
  0x30   :  { %p1420_p9 = pnand %p1419_p8, %p1413_p5 }
  0x32   :  { %1423 = shalt.err (!%p1420_p9)
}
  0x33   :  { %s1503_s5 = smov 256   ;;  %s1504_s24 = smov 16  }
  0x34   :  { %29 = dma.hbm_to_vmem [thread:$0]  %s1729_s0, 4096, %s24_s26, [#allocation3], %s1503_s5, %s1503_s5, %s1504_s24  }
  0x35   :  { %s1505_s29 = smov [#allocation7]   ;;  %s1506_s11 = smov [#allocation10]  }
  0x36   :  { %s49_s30 = sshll.u32 %s1505_s29, 4  ;;  %s77_s12 = sshll.u32 %s1506_s11, 4  ;;  %s50_s30 = int_to_ptr.vmem [resolvable:$true] %s49_s30  ;;  %s78_s12 = int_to_ptr.vmem [resolvable:$true] %s77_s12 }
  0x37   :  { %s1424_s10 = scalar_lea.hbm %s1732_s3, 1024 }
  0x38   :  { %p1425_p10 = scmp.ne.s32.totalorder %s1732_s3, %s1424_s10  ;;  %p1428_p11 = scmp.lt.u32.totalorder %s1424_s10, %s1732_s3 }
  0x3a   :  { %p1430_p12 = pnand %p1428_p11, %p1425_p10 }
  0x3c   :  { %1433 = shalt.err (!%p1430_p12)
}
  0x3d   :  { %s1434_s0 = scalar_lea.vmem %s50_s30, 1024  ;;  %p1439_p0 = scmp.lt.s32.totalorder %s50_s30, %s50_s30 }
  0x3e   :  { %p1435_p13 = scmp.ne.s32.totalorder %s50_s30, %s1434_s0  ;;  %p1440_p1 = scmp.lt.s32.totalorder %s1434_s0, %s1434_s0 }
  0x40   :  { %p1441_p2 = por %p1440_p1, %p1439_p0 }
  0x42   :  { %p1442_p3 = pnand %p1441_p2, %p1435_p13 }
  0x44   :  { %1445 = shalt.err (!%p1442_p3)
}
  0x45   :  { %55 = dma.hbm_to_vmem [thread:$0]  %s1732_s3, 1024, %s50_s30, [#allocation6], %s1499_s19, %s1499_s19, %s1500_s20  }
  0x46   :  { %s1446_s23 = scalar_lea.hbm %s1736_s7, 2048 }
  0x47   :  { %p1447_p4 = scmp.ne.s32.totalorder %s1736_s7, %s1446_s23  ;;  %p1450_p5 = scmp.lt.u32.totalorder %s1446_s23, %s1736_s7 }
  0x49   :  { %p1452_p6 = pnand %p1450_p5, %p1447_p4 }
  0x4b   :  { %1455 = shalt.err (!%p1452_p6)
}
  0x4c   :  { %s1456_s11 = scalar_lea.vmem %s78_s12, 2048  ;;  %p1461_p8 = scmp.lt.s32.totalorder %s78_s12, %s78_s12 }
  0x4d   :  { %p1457_p7 = scmp.ne.s32.totalorder %s78_s12, %s1456_s11  ;;  %p1462_p9 = scmp.lt.s32.totalorder %s1456_s11, %s1456_s11 }
  0x4f   :  { %p1463_p10 = por %p1462_p9, %p1461_p8 }
  0x51   :  { %p1464_p11 = pnand %p1463_p10, %p1457_p7 }
  0x53   :  { %1467 = shalt.err (!%p1464_p11)
}
  0x54   :  { %s1507_s3 = smov 128   ;;  %s1508_s19 = smov 8  }
  0x55   :  { %83 = dma.hbm_to_vmem [thread:$0]  %s1736_s7, 2048, %s78_s12, [#allocation9], %s1507_s3, %s1507_s3, %s1508_s19  }
  0x56   :  { %1490 = dma.done.wait [#allocation3], 4096  }
  0x57   :  { %1491 = vsyncadd [#allocation3], 4294963200 }
  0x58   :  { %1492 = dma.done.wait [#allocation6], 3072  }
  0x59   :  { %1493 = vsyncadd [#allocation6], 4294964224 }
  0x5a   :  { %1494 = dma.done.wait [#allocation9], 3072  }
  0x5b   :  { %1495 = vsyncadd [#allocation9], 4294964224  ;;  %v1302_v0 = vld [vmem:[#allocation5 + $0x40] sm:$0xff]   ;;  %v1304_v2 = vld [vmem:[#allocation5 + $0x48] sm:$0xff]  }
  0x5c   :  { %v1303_v1 = vld [vmem:[#allocation5] sm:$0xff]   ;;  %1113 = vmatprep.subr.bf16.mxu0 %v1302_v0  ;;  %1273 = vmatprep.subr.bf16.mxu1 %v1302_v0  ;;  %v1305_v3 = vld [vmem:[#allocation5 + $0x8] sm:$0xff]   ;;  %v1306_v4 = vld [vmem:[#allocation5 + $0x50] sm:$0xff]  }
  0x5d   :  { %1114 = vmatpush3.bf16.msra.mxu0 %v1303_v1  ;;  %1281 = vmatpush3.bf16.msra.mxu1 %v1303_v1  ;;  %v1307_v5 = vld [vmem:[#allocation5 + $0x10] sm:$0xff]   ;;  %v1308_v6 = vld [vmem:[#allocation5 + $0x58] sm:$0xff]   ;;  %v1310_v8 = vld [vmem:[#allocation5 + $0x60] sm:$0xff]  }
  0x5e   :  { %1115 = vmatprep.subr.bf16.mxu0 %v1304_v2  ;;  %1274 = vmatprep.subr.bf16.mxu1 %v1304_v2  ;;  %v1309_v7 = vld [vmem:[#allocation5 + $0x18] sm:$0xff]   ;;  %v1311_v9 = vld [vmem:[#allocation5 + $0x20] sm:$0xff]   ;;  %v1312_v10 = vld [vmem:[#allocation5 + $0x68] sm:$0xff]  }
  0x5f   :  { %v103_v11 = vld [vmem:[#allocation2 + $0x8] sm:$0xff]  ;;  %v105_v12 = vld [vmem:[#allocation2 + $0x18] sm:$0xff]  ;;  %v1314_v15 = vld [vmem:[#allocation5 + $0x70] sm:$0xff]  }
  0x60   :  { %v135_v13 = vpack.c.bf16 %v105_v12, %v103_v11  ;;  %v1313_v14 = vld [vmem:[#allocation5 + $0x28] sm:$0xff]   ;;  %v121_v17 = vld [vmem:[#allocation2 + $0x98] sm:$0xff]  ;;  %v1315_v19 = vld [vmem:[#allocation5 + $0x30] sm:$0xff]  }
  0x61   :  { %1116 = vmatpush3.bf16.msra.mxu0 %v1305_v3  ;;  %1282 = vmatpush3.bf16.msra.mxu1 %v1305_v3  ;;  %v119_v16 = vld [vmem:[#allocation2 + $0x88] sm:$0xff]  ;;  %v1316_v20 = vld [vmem:[#allocation5 + $0x78] sm:$0xff]   ;;  %v102_v22 = vld [vmem:[#allocation2] sm:$0xff] }
  0x62   :  { %1117 = vmatprep.subr.bf16.mxu0 %v1306_v4  ;;  %1275 = vmatprep.subr.bf16.mxu1 %v1306_v4  ;;  %v143_v18 = vpack.c.bf16 %v121_v17, %v119_v16  ;;  %v1317_v21 = vld [vmem:[#allocation5 + $0x38] sm:$0xff]   ;;  %v104_v23 = vld [vmem:[#allocation2 + $0x10] sm:$0xff]  ;;  %v107_v24 = vld [vmem:[#allocation2 + $0x28] sm:$0xff] }
  0x63   :  { %317 = vmatprep.mubr.bf16.mxu0 %v135_v13  ;;  %v109_v25 = vld [vmem:[#allocation2 + $0x38] sm:$0xff]  ;;  %v118_v26 = vld [vmem:[#allocation2 + $0x80] sm:$0xff]  ;;  %v120_v27 = vld [vmem:[#allocation2 + $0x90] sm:$0xff]  ;;  %v134_v31 = vpack.c.bf16 %v104_v23, %v102_v22 }
  0x64   :  { %349 = vmatprep.mubr.bf16.mxu1 %v143_v18  ;;  %v123_v28 = vld [vmem:[#allocation2 + $0xa8] sm:$0xff]  ;;  %v125_v29 = vld [vmem:[#allocation2 + $0xb8] sm:$0xff]  ;;  %v1318_v30 = vld [vmem:[#allocation7] sm:$0xff]   ;;  %v137_v32 = vpack.c.bf16 %v109_v25, %v107_v24  ;;  %v142_v33 = vpack.c.bf16 %v120_v27, %v118_v26 }
  0x65   :  { %1118 = vmatpush3.bf16.msra.mxu0 %v1307_v5  ;;  %1283 = vmatpush3.bf16.msra.mxu1 %v1307_v5  ;;  %v1319_v34 = vld [vmem:[#allocation7 + $0x8] sm:$0xff]   ;;  %v145_v35 = vpack.c.bf16 %v125_v29, %v123_v28  ;;  %v106_v36 = vld [vmem:[#allocation2 + $0x20] sm:$0xff]  ;;  %v108_v37 = vld [vmem:[#allocation2 + $0x30] sm:$0xff] }
  0x66   :  { %1119 = vmatprep.subr.bf16.mxu0 %v1308_v6  ;;  %1276 = vmatprep.subr.bf16.mxu1 %v1308_v6  ;;  %v111_v38 = vld [vmem:[#allocation2 + $0x48] sm:$0xff]  ;;  %v113_v39 = vld [vmem:[#allocation2 + $0x58] sm:$0xff]  ;;  %v122_v40 = vld [vmem:[#allocation2 + $0xa0] sm:$0xff]  ;;  %v136_v45 = vpack.c.bf16 %v108_v37, %v106_v36 }
  0x67   :  { %v124_v41 = vld [vmem:[#allocation2 + $0xb0] sm:$0xff]  ;;  %v127_v42 = vld [vmem:[#allocation2 + $0xc8] sm:$0xff]  ;;  %v129_v43 = vld [vmem:[#allocation2 + $0xd8] sm:$0xff]  ;;  %v139_v46 = vpack.c.bf16 %v113_v39, %v111_v38 }
  0x68   :  { %v1320_v44 = vld [vmem:[#allocation7 + $0x10] sm:$0xff]   ;;  %v144_v47 = vpack.c.bf16 %v124_v41, %v122_v40  ;;  %v1321_v48 = vld [vmem:[#allocation7 + $0x18] sm:$0xff]   ;;  %v147_v49 = vpack.c.bf16 %v129_v43, %v127_v42  ;;  %v110_v50 = vld [vmem:[#allocation2 + $0x40] sm:$0xff] }
  0x69   :  { %1120 = vmatpush3.bf16.msra.mxu0 %v1309_v7  ;;  %1284 = vmatpush3.bf16.msra.mxu1 %v1309_v7  ;;  %v112_v51 = vld [vmem:[#allocation2 + $0x50] sm:$0xff]  ;;  %v115_v52 = vld [vmem:[#allocation2 + $0x68] sm:$0xff]  ;;  %v117_v53 = vld [vmem:[#allocation2 + $0x78] sm:$0xff] }
  0x6a   :  { %1121 = vmatprep.subr.bf16.mxu0 %v1310_v8  ;;  %1277 = vmatprep.subr.bf16.mxu1 %v1310_v8  ;;  %v126_v54 = vld [vmem:[#allocation2 + $0xc0] sm:$0xff]  ;;  %v128_v55 = vld [vmem:[#allocation2 + $0xd0] sm:$0xff]  ;;  %v131_v56 = vld [vmem:[#allocation2 + $0xe8] sm:$0xff]  ;;  %v138_v58 = vpack.c.bf16 %v112_v51, %v110_v50  ;;  %v141_v59 = vpack.c.bf16 %v117_v53, %v115_v52 }
  0x6b   :  { %v133_v57 = vld [vmem:[#allocation2 + $0xf8] sm:$0xff]  ;;  %v146_v60 = vpack.c.bf16 %v128_v55, %v126_v54  ;;  %v114_v62 = vld [vmem:[#allocation2 + $0x60] sm:$0xff]  ;;  %v116_v63 = vld [vmem:[#allocation2 + $0x70] sm:$0xff] }
  0x6c   :  { %v149_v61 = vpack.c.bf16 %v133_v57, %v131_v56  ;;  %v130_v0 = vld [vmem:[#allocation2 + $0xe0] sm:$0xff]  ;;  %v132_v1 = vld [vmem:[#allocation2 + $0xf0] sm:$0xff]  ;;  %v140_v2 = vpack.c.bf16 %v116_v63, %v114_v62  ;;  %v1323_v5 = vld [vmem:[#allocation7 + $0x28] sm:$0xff]  }
  0x6d   :  { %1122 = vmatpush3.bf16.msra.mxu0 %v1311_v9  ;;  %1285 = vmatpush3.bf16.msra.mxu1 %v1311_v9  ;;  %v148_v3 = vpack.c.bf16 %v132_v1, %v130_v0  ;;  %v1322_v4 = vld [vmem:[#allocation7 + $0x20] sm:$0xff]   ;;  %v1324_v6 = vld [vmem:[#allocation7 + $0x30] sm:$0xff]   ;;  %v1325_v7 = vld [vmem:[#allocation7 + $0x38] sm:$0xff]  }
  0x6e   :  { %1123 = vmatprep.subr.bf16.mxu0 %v1312_v10  ;;  %1278 = vmatprep.subr.bf16.mxu1 %v1312_v10  ;;  %v1633_v8 = vld [vmem:[#allocation8] sm:$0xff]  }
  0x6f   :  { %v1639_v10 = vld [vmem:[%s1731_s2] ss:$0 sm:$0xff] }
  0x71   :  { %1124 = vmatpush3.bf16.msra.mxu0 %v1313_v14  ;;  %1286 = vmatpush3.bf16.msra.mxu1 %v1313_v14 }
  0x72   :  { %1125 = vmatprep.subr.bf16.mxu0 %v1314_v15  ;;  %1279 = vmatprep.subr.bf16.mxu1 %v1314_v15 }
  0x75   :  { %1126 = vmatpush3.bf16.msra.mxu0 %v1315_v19  ;;  %1287 = vmatpush3.bf16.msra.mxu1 %v1315_v19 }
  0x76   :  { %1127 = vmatprep.subr.bf16.mxu0 %v1316_v20  ;;  %1280 = vmatprep.subr.bf16.mxu1 %v1316_v20 }
  0x79   :  { %1128 = vmatpush3.bf16.msra.mxu0 %v1317_v21  ;;  %1288 = vmatpush3.bf16.msra.mxu1 %v1317_v21 }
  0x7a   :  { %1209 = vmatprep.subr.bf16.mxu1 %v1318_v30 }
  0x7c   :  { %318 = vmatmul.mubr.bf16.vlgmr.msra.gmra.mrb[0].mxu0 %v134_v31  ;;  %350 = vmatmul.mubr.bf16.vlgmr.msra.gmra.mrb[0].mxu1 %v142_v33 }
  0x7d   :  { %325 = vmatprep.mubr.bf16.mxu0 %v137_v32  ;;  %357 = vmatprep.mubr.bf16.mxu1 %v145_v35 }
  0x7e   :  { %1210 = vmatpush3.bf16.msra.mxu1 %v1318_v30 }
  0x7f   :  { %1211 = vmatprep.subr.bf16.mxu1 %v1319_v34 }
  0x82   :  { %1212 = vmatpush3.bf16.msra.mxu1 %v1319_v34 }
  0x83   :  { %1213 = vmatprep.subr.bf16.mxu1 %v1320_v44 }
  0x84   :  { %326 = vmatmul.mubr.bf16.gmra.mrb[4].mxu0 %v136_v45  ;;  %358 = vmatmul.mubr.bf16.gmra.mrb[4].mxu1 %v144_v47 }
  0x85   :  { %333 = vmatprep.mubr.bf16.mxu0 %v139_v46  ;;  %365 = vmatprep.mubr.bf16.mxu1 %v147_v49 }
  0x86   :  { %1214 = vmatpush3.bf16.msra.mxu1 %v1320_v44 }
  0x87   :  { %1215 = vmatprep.subr.bf16.mxu1 %v1321_v48 }
  0x8a   :  { %1216 = vmatpush3.bf16.msra.mxu1 %v1321_v48 }
  0x8b   :  { %1217 = vmatprep.subr.bf16.mxu1 %v1322_v4 }
  0x8c   :  { %334 = vmatmul.mubr.bf16.gmra.mrb[8].mxu0 %v138_v58  ;;  %366 = vmatmul.mubr.bf16.gmra.mrb[8].mxu1 %v146_v60 }
  0x8d   :  { %341 = vmatprep.mubr.bf16.mxu0 %v141_v59  ;;  %373 = vmatprep.mubr.bf16.mxu1 %v149_v61  ;;  %v1327_v59 = vld [vmem:[#allocation8 + $0x8] sm:$0xff]  }
  0x8e   :  { %1218 = vmatpush3.bf16.msra.mxu1 %v1322_v4 }
  0x8f   :  { %1219 = vmatprep.subr.bf16.mxu1 %v1323_v5 }
  0x92   :  { %1220 = vmatpush3.bf16.msra.mxu1 %v1323_v5 }
  0x93   :  { %1221 = vmatprep.subr.bf16.mxu1 %v1324_v6 }
  0x94   :  { %342 = vmatmul.mubr.bf16.gmra.mrb[12].mxu0 %v140_v2  ;;  %374 = vmatmul.mubr.bf16.gmra.mrb[12].mxu1 %v148_v3 }
  0x96   :  { %1222 = vmatpush3.bf16.msra.mxu1 %v1324_v6  ;;  %v1328_v6 = vld [vmem:[#allocation8 + $0x10] sm:$0xff]  }
  0x97   :  { %1223 = vmatprep.subr.bf16.mxu1 %v1325_v7 }
  0x9a   :  { %1224 = vmatpush3.bf16.msra.mxu1 %v1325_v7 }
  0x9b   :  { %1241 = vmatprep.subr.bf16.mxu1 %v1633_v8 }
 0x14f   :  { %v1129_v9 = vpop.f32.mrb[0].mxu0  ;;  %v1153_v12 = vpop.f32.mrb[0].mxu1 }
 0x150   :  { %v1130_v11 = vpop.f32.mrb[1].mxu0  ;;  %v1154_v15 = vpop.f32.mrb[1].mxu1 }
 0x151   :  { %v1131_v13 = vadd.f32 %v1130_v11, %v1129_v9  ;;  %v1132_v14 = vpop.f32.mrb[2].mxu0  ;;  %v1155_v17 = vadd.f32 %v1154_v15, %v1153_v12  ;;  %v1156_v18 = vpop.f32.mrb[2].mxu1 }
 0x152   :  { %v1133_v16 = vpop.f32.mrb[3].mxu0  ;;  %v1157_v21 = vpop.f32.mrb[3].mxu1 }
 0x153   :  { %v320_v19 = vadd.f32 %v1131_v13, %v1639_v10  ;;  %v1134_v20 = vadd.f32 %v1133_v16, %v1132_v14  ;;  %v352_v22 = vadd.f32 %v1155_v17, %v1639_v10  ;;  %v1158_v23 = vadd.f32 %v1157_v21, %v1156_v18 }
 0x155   :  { %v323_v24 = vadd.f32 %v1134_v20, %v1639_v10  ;;  %v390_v25 = vmax.f32 %v352_v22, 0.0  ;;  %v355_v26 = vadd.f32 %v1158_v23, %v1639_v10  ;;  %v382_v27 = vmax.f32 %v320_v19, 0.0 }
 0x157   :  { %v383_v28 = vmax.f32 %v323_v24, 0.0  ;;  %v1135_v29 = vpop.f32.mrb[4].mxu0  ;;  %v391_v31 = vmax.f32 %v355_v26, 0.0  ;;  %v1159_v32 = vpop.f32.mrb[4].mxu1 }
 0x158   :  { %v1136_v30 = vpop.f32.mrb[5].mxu0  ;;  %v1160_v36 = vpop.f32.mrb[5].mxu1 }
 0x159   :  { %v1137_v33 = vadd.f32 %v1136_v30, %v1135_v29  ;;  %v1138_v34 = vpop.f32.mrb[6].mxu0  ;;  %v398_v35 = vpack.c.bf16 %v383_v28, %v382_v27  ;;  %v1161_v38 = vadd.f32 %v1160_v36, %v1159_v32  ;;  %v1162_v39 = vpop.f32.mrb[6].mxu1  ;;  %v1645_v40 = vpack.c.bf16 %v391_v31, %v390_v25  ;;  %v1330_v31 = vld [vmem:[#allocation8 + $0x20] sm:$0xff]  }
 0x15a   :  { %v1139_v37 = vpop.f32.mrb[7].mxu0  ;;  %v1163_v43 = vpop.f32.mrb[7].mxu1 }
 0x15b   :  { %v328_v41 = vadd.f32 %v1137_v33, %v1639_v10  ;;  %v1140_v42 = vadd.f32 %v1139_v37, %v1138_v34  ;;  %1225 = vmatprep.mubr.bf16.mxu1 %v398_v35  ;;  %v360_v44 = vadd.f32 %v1161_v38, %v1639_v10  ;;  %v1164_v45 = vadd.f32 %v1163_v43, %v1162_v39  ;;  %v1331_v38 = vld [vmem:[#allocation8 + $0x28] sm:$0xff]  }
 0x15c   :  { %v1336_v43 = vld [vmem:[#allocation10 + $0x4] ss:$8 sps:$4 sm:$0xff]  }
 0x15d   :  { %v331_v46 = vadd.f32 %v1140_v42, %v1639_v10  ;;  %v392_v47 = vmax.f32 %v360_v44, 0.0  ;;  %v363_v48 = vadd.f32 %v1164_v45, %v1639_v10  ;;  %v384_v49 = vmax.f32 %v328_v41, 0.0  ;;  %v1332_v41 = vld [vmem:[#allocation8 + $0x30] sm:$0xff]   ;;  %v1334_v42 = vld [vmem:[#allocation10] ss:$8 sps:$4 sm:$0xff]   ;;  %898 = vmatprep.subr.bf16.mxu0 %v1336_v43 }
 0x15e   :  { %v1339_v44 = vld [vmem:[#allocation10 + $0x14] ss:$8 sps:$4 sm:$0xff]   ;;  %899 = vmatpush1.bf16.msra.mxu0 %v1334_v42  ;;  %v1337_v45 = vld [vmem:[#allocation10 + $0x10] ss:$8 sps:$4 sm:$0xff]  }
 0x15f   :  { %v385_v50 = vmax.f32 %v331_v46, 0.0  ;;  %v1141_v51 = vpop.f32.mrb[8].mxu0  ;;  %v393_v53 = vmax.f32 %v363_v48, 0.0  ;;  %v1165_v54 = vpop.f32.mrb[8].mxu1  ;;  %900 = vmatprep.subr.bf16.mxu0 %v1339_v44  ;;  %v1340_v46 = vld [vmem:[#allocation10 + $0x20] ss:$8 sps:$4 sm:$0xff]  }
 0x160   :  { %v1142_v52 = vpop.f32.mrb[9].mxu0  ;;  %v1166_v58 = vpop.f32.mrb[9].mxu1  ;;  %v1343_v48 = vld [vmem:[#allocation10 + $0x30] ss:$8 sps:$4 sm:$0xff]  }
 0x161   :  { %v399_v55 = vpack.c.bf16 %v385_v50, %v384_v49  ;;  %v1143_v56 = vadd.f32 %v1142_v52, %v1141_v51  ;;  %v1144_v57 = vpop.f32.mrb[10].mxu0  ;;  %v1167_v61 = vadd.f32 %v1166_v58, %v1165_v54  ;;  %v1168_v62 = vpop.f32.mrb[10].mxu1  ;;  %v403_v63 = vpack.c.bf16 %v393_v53, %v392_v47  ;;  %v1345_v47 = vld [vmem:[#allocation10 + $0x34] ss:$8 sps:$4 sm:$0xff]   ;;  %v1348_v49 = vld [vmem:[#allocation10 + $0x44] ss:$8 sps:$4 sm:$0xff]  }
 0x162   :  { %v1145_v60 = vpop.f32.mrb[11].mxu0  ;;  %v1169_v2 = vpop.f32.mrb[11].mxu1  ;;  %901 = vmatpush1.bf16.msra.mxu0 %v1337_v45  ;;  %v1346_v50 = vld [vmem:[#allocation10 + $0x40] ss:$8 sps:$4 sm:$0xff]   ;;  %v1351_v51 = vld [vmem:[#allocation10 + $0x54] ss:$8 sps:$4 sm:$0xff]  }
 0x163   :  { %v336_v0 = vadd.f32 %v1143_v56, %v1639_v10  ;;  %v1146_v1 = vadd.f32 %v1145_v60, %v1144_v57  ;;  %1226 = vmatmul.mubr.bf16.vlgmr.msra.gmra.mrb[16].mxu1 %v399_v55  ;;  %v368_v3 = vadd.f32 %v1167_v61, %v1639_v10  ;;  %v1170_v4 = vadd.f32 %v1169_v2, %v1168_v62  ;;  %v1349_v52 = vld [vmem:[#allocation10 + $0x50] ss:$8 sps:$4 sm:$0xff]   ;;  %v1079_v53 = vld [vmem:[%s1733_s4] ss:$0 sm:$0xff] }
 0x164   :  { %1242 = vmatpush3.bf16.msra.mxu1 %v1633_v8  ;;  %v1329_v8 = vld [vmem:[#allocation8 + $0x18] sm:$0xff]  }
 0x165   :  { %v339_v5 = vadd.f32 %v1146_v1, %v1639_v10  ;;  %1243 = vmatprep.subr.bf16.mxu1 %v1327_v59  ;;  %v394_v7 = vmax.f32 %v368_v3, 0.0  ;;  %v371_v9 = vadd.f32 %v1170_v4, %v1639_v10  ;;  %v386_v11 = vmax.f32 %v336_v0, 0.0 }
 0x167   :  { %v387_v12 = vmax.f32 %v339_v5, 0.0  ;;  %v1147_v13 = vpop.f32.mrb[12].mxu0  ;;  %v395_v15 = vmax.f32 %v371_v9, 0.0  ;;  %v1171_v16 = vpop.f32.mrb[12].mxu1 }
 0x168   :  { %v1148_v14 = vpop.f32.mrb[13].mxu0  ;;  %1244 = vmatpush3.bf16.msra.mxu1 %v1327_v59  ;;  %v1172_v20 = vpop.f32.mrb[13].mxu1 }
 0x169   :  { %v1149_v17 = vadd.f32 %v1148_v14, %v1147_v13  ;;  %v1150_v18 = vpop.f32.mrb[14].mxu0  ;;  %v400_v19 = vpack.c.bf16 %v387_v12, %v386_v11  ;;  %1245 = vmatprep.subr.bf16.mxu1 %v1328_v6  ;;  %v1173_v22 = vadd.f32 %v1172_v20, %v1171_v16  ;;  %v1174_v23 = vpop.f32.mrb[14].mxu1  ;;  %v404_v24 = vpack.c.bf16 %v395_v15, %v394_v7 }
 0x16a   :  { %v1151_v21 = vpop.f32.mrb[15].mxu0  ;;  %v1175_v27 = vpop.f32.mrb[15].mxu1 }
 0x16b   :  { %v344_v25 = vadd.f32 %v1149_v17, %v1639_v10  ;;  %v1152_v26 = vadd.f32 %v1151_v21, %v1150_v18  ;;  %1229 = vmatprep.mubr.bf16.mxu1 %v400_v19  ;;  %v376_v28 = vadd.f32 %v1173_v22, %v1639_v10  ;;  %v1176_v29 = vadd.f32 %v1175_v27, %v1174_v23 }
 0x16c   :  { %1246 = vmatpush3.bf16.msra.mxu1 %v1328_v6 }
 0x16d   :  { %v347_v30 = vadd.f32 %v1152_v26, %v1639_v10  ;;  %1247 = vmatprep.subr.bf16.mxu1 %v1329_v8  ;;  %v396_v32 = vmax.f32 %v376_v28, 0.0  ;;  %v379_v33 = vadd.f32 %v1176_v29, %v1639_v10  ;;  %v388_v34 = vmax.f32 %v344_v25, 0.0  ;;  %v1333_v10 = vld [vmem:[#allocation8 + $0x38] sm:$0xff]  }
 0x16f   :  { %v389_v35 = vmax.f32 %v347_v30, 0.0  ;;  %v397_v36 = vmax.f32 %v379_v33, 0.0 }
 0x170   :  { %1248 = vmatpush3.bf16.msra.mxu1 %v1329_v8 }
 0x171   :  { %v401_v37 = vpack.c.bf16 %v389_v35, %v388_v34  ;;  %1249 = vmatprep.subr.bf16.mxu1 %v1330_v31  ;;  %v405_v39 = vpack.c.bf16 %v397_v36, %v396_v32 }
 0x173   :  { %1230 = vmatmul.mubr.bf16.gmra.mrb[20].mxu1 %v401_v37 }
 0x174   :  { %1233 = vmatprep.mubr.bf16.mxu1 %v1645_v40  ;;  %1250 = vmatpush3.bf16.msra.mxu1 %v1330_v31  ;;  %v1342_v40 = vld [vmem:[#allocation10 + $0x24] ss:$8 sps:$4 sm:$0xff]  }
 0x175   :  { %1251 = vmatprep.subr.bf16.mxu1 %v1331_v38  ;;  %902 = vmatprep.subr.bf16.mxu0 %v1342_v40 }
 0x176   :  { %903 = vmatpush1.bf16.msra.mxu0 %v1340_v46  ;;  %v1354_v46 = vld [vmem:[#allocation10 + $0x64] ss:$8 sps:$4 sm:$0xff]  }
 0x177   :  { %904 = vmatprep.subr.bf16.mxu0 %v1345_v47  ;;  %v1352_v47 = vld [vmem:[#allocation10 + $0x60] ss:$8 sps:$4 sm:$0xff]  }
 0x178   :  { %1252 = vmatpush3.bf16.msra.mxu1 %v1331_v38 }
 0x179   :  { %1253 = vmatprep.subr.bf16.mxu1 %v1332_v41 }
 0x17a   :  { %905 = vmatpush1.bf16.msra.mxu0 %v1343_v48  ;;  %v1357_v48 = vld [vmem:[#allocation10 + $0x74] ss:$8 sps:$4 sm:$0xff]  }
 0x17b   :  { %1234 = vmatmul.mubr.bf16.gmra.mrb[24].mxu1 %v403_v63  ;;  %906 = vmatprep.subr.bf16.mxu0 %v1348_v49  ;;  %v1355_v49 = vld [vmem:[#allocation10 + $0x70] ss:$8 sps:$4 sm:$0xff]  }
 0x17c   :  { %1237 = vmatprep.mubr.bf16.mxu1 %v404_v24  ;;  %1254 = vmatpush3.bf16.msra.mxu1 %v1332_v41 }
 0x17d   :  { %1255 = vmatprep.subr.bf16.mxu1 %v1333_v10 }
 0x17e   :  { %907 = vmatpush1.bf16.msra.mxu0 %v1346_v50  ;;  %v1509_v50 = vmov 0  }
 0x17f   :  { %908 = vmatprep.subr.bf16.mxu0 %v1351_v51  ;;  %930 = vmatprep.mubr.bf16.mxu0 %v1509_v50  ;;  %v1088_v51 = vld [vmem:[%s1735_s6] ss:$0 sm:$0xff] }
 0x180   :  { %1256 = vmatpush3.bf16.msra.mxu1 %v1333_v10 }
 0x182   :  { %909 = vmatpush1.bf16.msra.mxu0 %v1349_v52 }
 0x183   :  { %1238 = vmatmul.mubr.bf16.gmra.mrb[28].mxu1 %v405_v39  ;;  %910 = vmatprep.subr.bf16.mxu0 %v1354_v46 }
 0x186   :  { %911 = vmatpush1.bf16.msra.mxu0 %v1352_v47  ;;  %v806_v47 = vld [vmem:[%s1737_s8] sm:$0x3]  ;;  %s1510_s8 = smov [#allocation11]  }
 0x187   :  { %912 = vmatprep.subr.bf16.mxu0 %v1357_v48  ;;  %s1048_s14 = sshll.u32 %s1510_s8, 4  ;;  %s1049_s14 = int_to_ptr.vmem [resolvable:$true] %s1048_s14 }
 0x188   :  { %s1468_s15 = scalar_lea.vmem %s1049_s14, 4096  ;;  %p1473_p13 = scmp.lt.s32.totalorder %s1049_s14, %s1049_s14 }
 0x189   :  { %p1469_p12 = scmp.ne.s32.totalorder %s1049_s14, %s1468_s15  ;;  %p1474_p0 = scmp.lt.s32.totalorder %s1468_s15, %s1468_s15 }
 0x18a   :  { %913 = vmatpush1.bf16.msra.mxu0 %v1355_v49 }
 0x18b   :  { %p1475_p1 = por %p1474_p0, %p1473_p13 }
 0x18d   :  { %p1476_p2 = pnand %p1475_p1, %p1469_p12 }
 0x236   :  { %v1227_v54 = vpop.f32.mrb[16].mxu1 }
 0x237   :  { %v520_v55 = vadd.f32 %v1227_v54, %v1079_v53  ;;  %v511_v56 = vpop.f32.mrb[17].mxu1 }
 0x238   :  { %v512_v57 = vadd.f32 %v1079_v53, %v511_v56  ;;  %v1228_v58 = vpop.f32.mrb[18].mxu1 }
 0x239   :  { %v523_v59 = vadd.f32 %v1228_v58, %v1079_v53  ;;  %v514_v60 = vpop.f32.mrb[19].mxu1  ;;  %v576_v62 = vmax.f32 %v520_v55, 0.0 }
 0x23a   :  { %v515_v61 = vadd.f32 %v1079_v53, %v514_v60  ;;  %v574_v0 = vmax.f32 %v512_v57, 0.0 }
 0x23b   :  { %v577_v63 = vmax.f32 %v523_v59, 0.0 }
 0x23c   :  { %v575_v1 = vmax.f32 %v515_v61, 0.0 }
 0x23d   :  { %v591_v2 = vpack.c.bf16 %v577_v63, %v576_v62 }
 0x23e   :  { %v590_v3 = vpack.c.bf16 %v575_v1, %v574_v0 }
 0x240   :  { %1257 = vmatprep.mubr.bf16.mxu1 %v590_v3 }
 0x241   :  { %1258 = vmatmul.mubr.bf16.vlgmr.msra.gmra.mrb[32].mxu1 %v591_v2 }
 0x246   :  { %v1231_v4 = vpop.f32.mrb[20].mxu1 }
 0x247   :  { %v536_v5 = vadd.f32 %v1231_v4, %v1079_v53  ;;  %v527_v6 = vpop.f32.mrb[21].mxu1 }
 0x248   :  { %v528_v7 = vadd.f32 %v1079_v53, %v527_v6  ;;  %v1232_v9 = vpop.f32.mrb[22].mxu1 }
 0x249   :  { %v539_v11 = vadd.f32 %v1232_v9, %v1079_v53  ;;  %v530_v12 = vpop.f32.mrb[23].mxu1  ;;  %v580_v14 = vmax.f32 %v536_v5, 0.0 }
 0x24a   :  { %v531_v13 = vadd.f32 %v1079_v53, %v530_v12  ;;  %v578_v16 = vmax.f32 %v528_v7, 0.0 }
 0x24b   :  { %v581_v15 = vmax.f32 %v539_v11, 0.0 }
 0x24c   :  { %v579_v17 = vmax.f32 %v531_v13, 0.0 }
 0x24d   :  { %v593_v18 = vpack.c.bf16 %v581_v15, %v580_v14 }
 0x24e   :  { %v592_v19 = vpack.c.bf16 %v579_v17, %v578_v16  ;;  %v1235_v20 = vpop.f32.mrb[24].mxu1 }
 0x24f   :  { %v552_v8 = vadd.f32 %v1235_v20, %v1079_v53  ;;  %v543_v21 = vpop.f32.mrb[25].mxu1 }
 0x250   :  { %v544_v22 = vadd.f32 %v1079_v53, %v543_v21  ;;  %v1236_v23 = vpop.f32.mrb[26].mxu1  ;;  %1261 = vmatprep.mubr.bf16.mxu1 %v592_v19 }
 0x251   :  { %v584_v24 = vmax.f32 %v552_v8, 0.0  ;;  %v555_v25 = vadd.f32 %v1236_v23, %v1079_v53  ;;  %v546_v26 = vpop.f32.mrb[27].mxu1  ;;  %1262 = vmatmul.mubr.bf16.gmra.mrb[36].mxu1 %v593_v18 }
 0x252   :  { %v582_v27 = vmax.f32 %v544_v22, 0.0  ;;  %v547_v28 = vadd.f32 %v1079_v53, %v546_v26 }
 0x253   :  { %v585_v29 = vmax.f32 %v555_v25, 0.0 }
 0x254   :  { %v583_v30 = vmax.f32 %v547_v28, 0.0 }
 0x255   :  { %v595_v31 = vpack.c.bf16 %v585_v29, %v584_v24 }
 0x256   :  { %v594_v32 = vpack.c.bf16 %v583_v30, %v582_v27  ;;  %v1239_v33 = vpop.f32.mrb[28].mxu1 }
 0x257   :  { %v568_v34 = vadd.f32 %v1239_v33, %v1079_v53  ;;  %v559_v35 = vpop.f32.mrb[29].mxu1 }
 0x258   :  { %1265 = vmatprep.mubr.bf16.mxu1 %v594_v32  ;;  %v560_v36 = vadd.f32 %v1079_v53, %v559_v35  ;;  %v1240_v37 = vpop.f32.mrb[30].mxu1 }
 0x259   :  { %1266 = vmatmul.mubr.bf16.gmra.mrb[40].mxu1 %v595_v31  ;;  %v588_v38 = vmax.f32 %v568_v34, 0.0  ;;  %v571_v39 = vadd.f32 %v1240_v37, %v1079_v53  ;;  %v562_v41 = vpop.f32.mrb[31].mxu1 }
 0x25a   :  { %v586_v10 = vmax.f32 %v560_v36, 0.0  ;;  %v563_v42 = vadd.f32 %v1079_v53, %v562_v41 }
 0x25b   :  { %v589_v43 = vmax.f32 %v571_v39, 0.0 }
 0x25c   :  { %v587_v44 = vmax.f32 %v563_v42, 0.0 }
 0x25d   :  { %v597_v45 = vpack.c.bf16 %v589_v43, %v588_v38 }
 0x25e   :  { %v596_v40 = vpack.c.bf16 %v587_v44, %v586_v10 }
 0x260   :  { %1269 = vmatprep.mubr.bf16.mxu1 %v596_v40 }
 0x261   :  { %1270 = vmatmul.mubr.bf16.gmra.mrb[44].mxu1 %v597_v45  ;;  %v808_v45 = vlaneseq }
 0x263   :  { %v809_v40 = vshrl.u32 %v808_v45, 7 }
 0x265   :  { %v810_v46 = vsub.s32 0, %v809_v40  ;;  %v814_v48 = vsub.s32 1, %v809_v40 }
 0x267   :  { %v1678_v49 = vrot.slane %v806_v47, %v810_v46 }
 0x314   :  { %v1259_v52 = vpop.f32.mrb[32].mxu1 }
 0x315   :  { %v712_v53 = vadd.f32 %v1259_v52, %v1088_v51  ;;  %v703_v54 = vpop.f32.mrb[33].mxu1 }
 0x316   :  { %v704_v55 = vadd.f32 %v1088_v51, %v703_v54  ;;  %v1260_v56 = vpop.f32.mrb[34].mxu1 }
 0x317   :  { %v715_v57 = vadd.f32 %v1260_v56, %v1088_v51  ;;  %v706_v58 = vpop.f32.mrb[35].mxu1  ;;  %v768_v60 = vmax.f32 %v712_v53, 0.0 }
 0x318   :  { %v707_v59 = vadd.f32 %v1088_v51, %v706_v58  ;;  %v766_v62 = vmax.f32 %v704_v55, 0.0 }
 0x319   :  { %v769_v61 = vmax.f32 %v715_v57, 0.0 }
 0x31a   :  { %v767_v63 = vmax.f32 %v707_v59, 0.0 }
 0x31b   :  { %v783_v0 = vpack.c.bf16 %v769_v61, %v768_v60 }
 0x31c   :  { %v782_v1 = vpack.c.bf16 %v767_v63, %v766_v62 }
 0x31e   :  { %931 = vmatmul.mubr.bf16.vlgmr.msra.gmra.mrb[16].mxu0 %v782_v1 }
 0x31f   :  { %940 = vmatprep.mubr.bf16.mxu0 %v1509_v50 }
 0x324   :  { %v1263_v2 = vpop.f32.mrb[36].mxu1 }
 0x325   :  { %v728_v3 = vadd.f32 %v1263_v2, %v1088_v51  ;;  %v719_v4 = vpop.f32.mrb[37].mxu1 }
 0x326   :  { %v720_v5 = vadd.f32 %v1088_v51, %v719_v4  ;;  %v1264_v6 = vpop.f32.mrb[38].mxu1  ;;  %941 = vmatmul.mubr.bf16.gmra.mrb[20].mxu0 %v783_v0 }
 0x327   :  { %v731_v7 = vadd.f32 %v1264_v6, %v1088_v51  ;;  %v722_v9 = vpop.f32.mrb[39].mxu1  ;;  %950 = vmatprep.mubr.bf16.mxu0 %v1509_v50  ;;  %v772_v12 = vmax.f32 %v728_v3, 0.0 }
 0x328   :  { %v723_v11 = vadd.f32 %v1088_v51, %v722_v9  ;;  %v770_v14 = vmax.f32 %v720_v5, 0.0 }
 0x329   :  { %v773_v13 = vmax.f32 %v731_v7, 0.0 }
 0x32a   :  { %v771_v15 = vmax.f32 %v723_v11, 0.0 }
 0x32b   :  { %v785_v16 = vpack.c.bf16 %v773_v13, %v772_v12 }
 0x32c   :  { %v784_v17 = vpack.c.bf16 %v771_v15, %v770_v14  ;;  %v1267_v18 = vpop.f32.mrb[40].mxu1 }
 0x32d   :  { %v744_v19 = vadd.f32 %v1267_v18, %v1088_v51  ;;  %v735_v20 = vpop.f32.mrb[41].mxu1 }
 0x32e   :  { %v736_v8 = vadd.f32 %v1088_v51, %v735_v20  ;;  %v1268_v21 = vpop.f32.mrb[42].mxu1  ;;  %951 = vmatmul.mubr.bf16.gmra.mrb[24].mxu0 %v784_v17 }
 0x32f   :  { %v776_v22 = vmax.f32 %v744_v19, 0.0  ;;  %v747_v23 = vadd.f32 %v1268_v21, %v1088_v51  ;;  %v738_v24 = vpop.f32.mrb[43].mxu1  ;;  %960 = vmatprep.mubr.bf16.mxu0 %v1509_v50 }
 0x330   :  { %v739_v25 = vadd.f32 %v1088_v51, %v738_v24  ;;  %v774_v27 = vmax.f32 %v736_v8, 0.0 }
 0x331   :  { %v777_v26 = vmax.f32 %v747_v23, 0.0 }
 0x332   :  { %v775_v28 = vmax.f32 %v739_v25, 0.0 }
 0x333   :  { %v787_v29 = vpack.c.bf16 %v777_v26, %v776_v22 }
 0x334   :  { %v786_v30 = vpack.c.bf16 %v775_v28, %v774_v27  ;;  %v1271_v31 = vpop.f32.mrb[44].mxu1 }
 0x335   :  { %v760_v32 = vadd.f32 %v1271_v31, %v1088_v51  ;;  %v751_v33 = vpop.f32.mrb[45].mxu1 }
 0x336   :  { %961 = vmatmul.mubr.bf16.gmra.mrb[28].mxu0 %v785_v16  ;;  %v752_v34 = vadd.f32 %v1088_v51, %v751_v33  ;;  %v1272_v35 = vpop.f32.mrb[46].mxu1 }
 0x337   :  { %v780_v36 = vmax.f32 %v760_v32, 0.0  ;;  %v763_v37 = vadd.f32 %v1272_v35, %v1088_v51  ;;  %v754_v38 = vpop.f32.mrb[47].mxu1  ;;  %970 = vmatprep.mubr.bf16.mxu0 %v1509_v50 }
 0x338   :  { %v778_v39 = vmax.f32 %v752_v34, 0.0  ;;  %v755_v41 = vadd.f32 %v1088_v51, %v754_v38  ;;  %v1680_v51 = vrot.slane %v806_v47, %v814_v48 }
 0x339   :  { %v781_v10 = vmax.f32 %v763_v37, 0.0 }
 0x33a   :  { %v779_v42 = vmax.f32 %v755_v41, 0.0 }
 0x33b   :  { %v789_v43 = vpack.c.bf16 %v781_v10, %v780_v36 }
 0x33c   :  { %v788_v44 = vpack.c.bf16 %v779_v42, %v778_v39 }
 0x33e   :  { %971 = vmatmul.mubr.bf16.gmra.mrb[32].mxu0 %v786_v30 }
 0x33f   :  { %980 = vmatprep.mubr.bf16.mxu0 %v1509_v50 }
 0x346   :  { %981 = vmatmul.mubr.bf16.gmra.mrb[36].mxu0 %v787_v29 }
 0x347   :  { %990 = vmatprep.mubr.bf16.mxu0 %v1509_v50 }
 0x34e   :  { %991 = vmatmul.mubr.bf16.gmra.mrb[40].mxu0 %v788_v44 }
 0x34f   :  { %1000 = vmatprep.mubr.bf16.mxu0 %v1509_v50 }
 0x356   :  { %1001 = vmatmul.mubr.bf16.gmra.mrb[44].mxu0 %v789_v43 }
 0x3f1   :  { %v932_v52 = vpop.f32.mrb[16].mxu0 }
 0x3f2   :  { %v933_v53 = vadd.f32 %v932_v52, %v1678_v49  ;;  %v934_v54 = vpop.f32.mrb[17].mxu0 }
 0x3f3   :  { %v935_v55 = vadd.f32 %v934_v54, %v1680_v51  ;;  %v936_v50 = vpop.f32.mrb[18].mxu0 }
 0x3f4   :  { %1011 = vst [vmem:[#allocation11] sm:$0xff] %v933_v53  ;;  %v937_v56 = vadd.f32 %v936_v50, %v1678_v49  ;;  %v938_v57 = vpop.f32.mrb[19].mxu0 }
 0x3f5   :  { %1012 = vst [vmem:[#allocation11 + $0x8] sm:$0xff] %v935_v55  ;;  %v939_v58 = vadd.f32 %v938_v57, %v1680_v51 }
 0x3f6   :  { %1013 = vst [vmem:[#allocation11 + $0x10] sm:$0xff] %v937_v56 }
 0x3f7   :  { %1014 = vst [vmem:[#allocation11 + $0x18] sm:$0xff] %v939_v58 }
 0x3f9   :  { %v942_v59 = vpop.f32.mrb[20].mxu0 }
 0x3fa   :  { %v943_v60 = vadd.f32 %v942_v59, %v1678_v49  ;;  %v944_v61 = vpop.f32.mrb[21].mxu0 }
 0x3fb   :  { %v945_v62 = vadd.f32 %v944_v61, %v1680_v51  ;;  %v946_v63 = vpop.f32.mrb[22].mxu0 }
 0x3fc   :  { %1015 = vst [vmem:[#allocation11 + $0x20] sm:$0xff] %v943_v60  ;;  %v947_v0 = vadd.f32 %v946_v63, %v1678_v49  ;;  %v948_v1 = vpop.f32.mrb[23].mxu0 }
 0x3fd   :  { %1016 = vst [vmem:[#allocation11 + $0x28] sm:$0xff] %v945_v62  ;;  %v949_v2 = vadd.f32 %v948_v1, %v1680_v51 }
 0x3fe   :  { %1017 = vst [vmem:[#allocation11 + $0x30] sm:$0xff] %v947_v0 }
 0x3ff   :  { %1018 = vst [vmem:[#allocation11 + $0x38] sm:$0xff] %v949_v2 }
 0x401   :  { %v952_v3 = vpop.f32.mrb[24].mxu0 }
 0x402   :  { %v953_v4 = vadd.f32 %v952_v3, %v1678_v49  ;;  %v954_v5 = vpop.f32.mrb[25].mxu0 }
 0x403   :  { %v955_v6 = vadd.f32 %v954_v5, %v1680_v51  ;;  %v956_v7 = vpop.f32.mrb[26].mxu0 }
 0x404   :  { %1019 = vst [vmem:[#allocation11 + $0x40] sm:$0xff] %v953_v4  ;;  %v957_v9 = vadd.f32 %v956_v7, %v1678_v49  ;;  %v958_v11 = vpop.f32.mrb[27].mxu0 }
 0x405   :  { %1020 = vst [vmem:[#allocation11 + $0x48] sm:$0xff] %v955_v6  ;;  %v959_v12 = vadd.f32 %v958_v11, %v1680_v51 }
 0x406   :  { %1021 = vst [vmem:[#allocation11 + $0x50] sm:$0xff] %v957_v9 }
 0x407   :  { %1022 = vst [vmem:[#allocation11 + $0x58] sm:$0xff] %v959_v12 }
 0x409   :  { %v962_v13 = vpop.f32.mrb[28].mxu0 }
 0x40a   :  { %v963_v14 = vadd.f32 %v962_v13, %v1678_v49  ;;  %v964_v15 = vpop.f32.mrb[29].mxu0 }
 0x40b   :  { %v965_v16 = vadd.f32 %v964_v15, %v1680_v51  ;;  %v966_v17 = vpop.f32.mrb[30].mxu0 }
 0x40c   :  { %1023 = vst [vmem:[#allocation11 + $0x60] sm:$0xff] %v963_v14  ;;  %v967_v18 = vadd.f32 %v966_v17, %v1678_v49  ;;  %v968_v19 = vpop.f32.mrb[31].mxu0 }
 0x40d   :  { %1024 = vst [vmem:[#allocation11 + $0x68] sm:$0xff] %v965_v16  ;;  %v969_v20 = vadd.f32 %v968_v19, %v1680_v51 }
 0x40e   :  { %1025 = vst [vmem:[#allocation11 + $0x70] sm:$0xff] %v967_v18 }
 0x40f   :  { %1026 = vst [vmem:[#allocation11 + $0x78] sm:$0xff] %v969_v20 }
 0x411   :  { %v972_v8 = vpop.f32.mrb[32].mxu0 }
 0x412   :  { %v973_v21 = vadd.f32 %v972_v8, %v1678_v49  ;;  %v974_v22 = vpop.f32.mrb[33].mxu0 }
 0x413   :  { %v975_v23 = vadd.f32 %v974_v22, %v1680_v51  ;;  %v976_v24 = vpop.f32.mrb[34].mxu0 }
 0x414   :  { %1027 = vst [vmem:[#allocation11 + $0x80] sm:$0xff] %v973_v21  ;;  %v977_v25 = vadd.f32 %v976_v24, %v1678_v49  ;;  %v978_v26 = vpop.f32.mrb[35].mxu0 }
 0x415   :  { %1028 = vst [vmem:[#allocation11 + $0x88] sm:$0xff] %v975_v23  ;;  %v979_v27 = vadd.f32 %v978_v26, %v1680_v51 }
 0x416   :  { %1029 = vst [vmem:[#allocation11 + $0x90] sm:$0xff] %v977_v25 }
 0x417   :  { %1030 = vst [vmem:[#allocation11 + $0x98] sm:$0xff] %v979_v27 }
 0x419   :  { %v982_v28 = vpop.f32.mrb[36].mxu0 }
 0x41a   :  { %v983_v29 = vadd.f32 %v982_v28, %v1678_v49  ;;  %v984_v30 = vpop.f32.mrb[37].mxu0 }
 0x41b   :  { %v985_v31 = vadd.f32 %v984_v30, %v1680_v51  ;;  %v986_v32 = vpop.f32.mrb[38].mxu0 }
 0x41c   :  { %1031 = vst [vmem:[#allocation11 + $0xa0] sm:$0xff] %v983_v29  ;;  %v987_v33 = vadd.f32 %v986_v32, %v1678_v49  ;;  %v988_v34 = vpop.f32.mrb[39].mxu0 }
 0x41d   :  { %1032 = vst [vmem:[#allocation11 + $0xa8] sm:$0xff] %v985_v31  ;;  %v989_v35 = vadd.f32 %v988_v34, %v1680_v51 }
 0x41e   :  { %1033 = vst [vmem:[#allocation11 + $0xb0] sm:$0xff] %v987_v33 }
 0x41f   :  { %1034 = vst [vmem:[#allocation11 + $0xb8] sm:$0xff] %v989_v35 }
 0x421   :  { %v992_v36 = vpop.f32.mrb[40].mxu0 }
 0x422   :  { %v993_v37 = vadd.f32 %v992_v36, %v1678_v49  ;;  %v994_v38 = vpop.f32.mrb[41].mxu0 }
 0x423   :  { %v995_v39 = vadd.f32 %v994_v38, %v1680_v51  ;;  %v996_v41 = vpop.f32.mrb[42].mxu0 }
 0x424   :  { %1035 = vst [vmem:[#allocation11 + $0xc0] sm:$0xff] %v993_v37  ;;  %v997_v10 = vadd.f32 %v996_v41, %v1678_v49  ;;  %v998_v42 = vpop.f32.mrb[43].mxu0 }
 0x425   :  { %1036 = vst [vmem:[#allocation11 + $0xc8] sm:$0xff] %v995_v39  ;;  %v999_v43 = vadd.f32 %v998_v42, %v1680_v51 }
 0x426   :  { %1037 = vst [vmem:[#allocation11 + $0xd0] sm:$0xff] %v997_v10 }
 0x427   :  { %1038 = vst [vmem:[#allocation11 + $0xd8] sm:$0xff] %v999_v43 }
 0x429   :  { %v1002_v44 = vpop.f32.mrb[44].mxu0 }
 0x42a   :  { %v1003_v45 = vadd.f32 %v1002_v44, %v1678_v49  ;;  %v1004_v40 = vpop.f32.mrb[45].mxu0 }
 0x42b   :  { %v1005_v46 = vadd.f32 %v1004_v40, %v1680_v51  ;;  %v1006_v47 = vpop.f32.mrb[46].mxu0 }
 0x42c   :  { %1039 = vst [vmem:[#allocation11 + $0xe0] sm:$0xff] %v1003_v45  ;;  %v1007_v48 = vadd.f32 %v1006_v47, %v1678_v49  ;;  %v1008_v52 = vpop.f32.mrb[47].mxu0 }
 0x42d   :  { %1040 = vst [vmem:[#allocation11 + $0xe8] sm:$0xff] %v1005_v46  ;;  %v1009_v53 = vadd.f32 %v1008_v52, %v1680_v51 }
 0x42e   :  { %1041 = vst [vmem:[#allocation11 + $0xf0] sm:$0xff] %v1007_v48 }
 0x42f   :  { %1042 = vst [vmem:[#allocation11 + $0xf8] sm:$0xff] %v1009_v53 }
 0x430   :  { %1479 = shalt.err (!%p1476_p2)
}
 0x431   :  { %s1480_s0 = scalar_lea.hbm %s1738_s9, 4096 }
 0x432   :  { %p1481_p3 = scmp.ne.s32.totalorder %s1738_s9, %s1480_s0  ;;  %p1484_p4 = scmp.lt.u32.totalorder %s1480_s0, %s1738_s9 }
 0x434   :  { %p1486_p5 = pnand %p1484_p4, %p1481_p3 }
 0x436   :  { %1489 = shalt.err (!%p1486_p5)
}
 0x437   :  { %1054 = dma.vmem_to_hbm [thread:$0]  %s1049_s14, 4096, %s1738_s9, [#allocation4], %s1503_s5, %s1503_s5, %s1504_s24  }
 0x438   :  { %1496 = dma.done.wait [#allocation4], 4096  }
 0x439   :  { %1497 = vsyncadd [#allocation4], 4294963200 }
 0x43a   :  { %1058 = vsyncpa [#allocation3], 1 }
 0x43b   :  { %1059 = vsyncpa [#allocation6], 1 }
 0x43c   :  { %1060 = vsyncpa [#allocation9], 1 }
 0x43d   :  { %1061 = vsyncpa [#allocation4], 1 }

</bundles_post_ra>
